<compile_context>
chip_gen: v6e
topology: v6e:2x2x1
jax: 0.10.0
libtpu: 0.0.40
codegen_flags: <defaults>
</compile_context>

<pallas_src>
import functools

import jax
import jax.numpy as jnp
from jax.experimental import pallas as pl
from jax.experimental.pallas import tpu as pltpu


def _round_up(x, m):
    return ((x + m - 1) // m) * m


def _device_kind():
    try:
        return jax.devices()[0].device_kind.lower()
    except Exception:
        return ""


def _vmem_estimate(block_t, block_b, H):
    """Rough per-kernel VMEM footprint (bytes) for the chosen tile sizes."""
    x_blk = 2 * block_t * block_b * H * 2        # bf16 input, double-buffered
    out_blk = 2 * block_t * block_b * H * 4      # f32 outputs, double-buffered
    gi = block_t * block_b * 3 * H * 4           # f32 gate-input scratch (single)
    hN = 2 * block_b * H * 4                     # resident hidden carry
    w = 2 * (H * 3 * H * 2) + 4 * (3 * H + H)    # packed weights + biases
    return x_blk + out_blk + gi + hN + w


_VMEM_BLOCK_BUDGET = 40 * 1024 * 1024   # safe on every generation (v7x: 64 MiB)


def _batch_blocking(B, H):
    """Pick (B_pad, block_b): MXU-filling rows, >=2 blocks on v7x, VMEM-safe."""
    kind = _device_kind()
    # v6e / v7x MXUs are 256 rows tall; fill them when the batch allows.
    cap = 256 if ("v6" in kind or "v7" in kind) else 128
    while cap > 8 and _vmem_estimate(8, cap, H) > _VMEM_BLOCK_BUDGET:
        cap //= 2
    # v7x has two TensorCores per chip: give the "parallel" batch axis >= 2
    # blocks so both cores get work (don't shrink blocks on 1-TC chips).
    min_blocks = 2 if ("v7" in kind and B >= 16) else 1
    nblocks = max(min_blocks, -(-B // cap))
    block_b = min(cap, _round_up(-(-B // nblocks), 8))
    return nblocks * block_b, block_b


def _time_blocking(T, block_b, H):
    """Pick (block_t, ragged): big chunks amortize per-grid-step overhead;
    prefer a chunk size that divides T so no padding / masking is needed."""
    cap = 64
    while cap > 8 and _vmem_estimate(cap, block_b, H) > _VMEM_BLOCK_BUDGET:
        cap //= 2
    for bt in range(min(T, cap), 0, -1):
        if T % bt == 0 and (bt >= 8 or bt == T):
            return bt, False
    return min(T, cap), True     # ragged tail handled with a dynamic trip count


def _invariant_spec(block_shape):
    """BlockSpec for a grid-invariant input: constant block index and (when the
    installed Pallas supports it) a single pipeline buffer -- a second buffer
    would be wasted VMEM and a redundant DMA slot."""
    index_map = lambda b, t: tuple(0 for _ in block_shape)
    try:
        return pl.BlockSpec(block_shape, index_map, pipeline_mode=pl.Buffered(1))
    except Exception:
        return pl.BlockSpec(block_shape, index_map)


def _gru_kernel(x_ref, wih_ref, whh_ref, bgi_ref, bhn_ref, out_ref, hN_ref,
                gi_ref, *, hidden_size, block_t, block_b, seq_len, ragged,
                unroll):
    """One grid step == `block_t` GRU time steps for one batch block.

    x_ref   : (Tt, Bt, H)   bf16  embedded tokens for this chunk
    wih_ref : (H, 3H)       bf16  packed input weights  W_ih^T (gates r,z,n)
    whh_ref : (H, 3H)       bf16  packed hidden weights W_hh^T
    bgi_ref : (1, 3H)       f32   b_ih + [b_hr, b_hz, 0] (folded biases)
    bhn_ref : (1, H)        f32   b_hn (must stay inside r * (...))
    out_ref : (Tt, Bt, H)   f32   per-step GRU outputs
    hN_ref  : (Bt, H)       f32   resident hidden-state carry / final hidden
    gi_ref  : (Tt*Bt, 3H)   f32   scratch: this chunk's gate inputs
    """
    H = hidden_size
    tc = pl.program_id(1)                       # time-chunk index (sequential)

    @pl.when(tc == 0)
    def _():
        hN_ref[...] = jnp.zeros_like(hN_ref)

    # Chunk-level input projection: one big-M MXU matmul (bf16 in, f32 acc),
    # off the per-step critical path; result lives in single-buffered VMEM.
    x2d = x_ref[...].reshape(block_t * block_b, H)
    gi_ref[...] = (
        jnp.dot(x2d, wih_ref[...], preferred_element_type=jnp.float32)
        + bgi_ref[...])

    whh = whh_ref[...]                                     # hoisted (bf16)
    bhn = jnp.broadcast_to(bhn_ref[...], (block_b, H))     # hoisted broadcast

    def step(s, h):
        off = pl.multiple_of(s * block_b, block_b)
        gi_s = gi_ref[pl.ds(off, block_b), :]              # (Bt, 3H) f32
        # Single packed hidden matmul per step (bf16 operands, f32 accumulate).
        gh = jnp.dot(h.astype(jnp.bfloat16), whh,
                     preferred_element_type=jnp.float32)   # (Bt, 3H)
        # Fused r/z sigmoid over the contiguous first 2H columns.
        rz = jax.nn.sigmoid(gi_s[:, :2 * H] + gh[:, :2 * H])
        r = rz[:, :H]
        z = rz[:, H:]
        n = jnp.tanh(gi_s[:, 2 * H:] + r * (gh[:, 2 * H:] + bhn))
        h_new = n + z * (h - n)                            # == (1-z)*n + z*h
        out_ref[s] = h_new.astype(out_ref.dtype)
        return h_new

    h0 = hN_ref[...]
    if not ragged:
        h_final = jax.lax.fori_loop(0, block_t, step, h0, unroll=unroll)
    else:
        # Ragged tail (T % block_t != 0): run only the valid steps.  A dynamic
        # trip count keeps the hidden carry exact without per-step masking.
        n_valid = jnp.minimum(block_t, seq_len - tc * block_t)
        h_final = jax.lax.fori_loop(0, n_valid, step, h0)
    hN_ref[...] = h_final


def gru_forward_pallas(x, w_ih, w_hh, b_ih, b_hh, *, hidden_size, seq_len,
                       batch):
    """GRU recurrence over embedded inputs.

    x    : (T, B, H)  embedded tokens (time-major); cast to bf16 for streaming
    w_ih : (3H, H)    PyTorch-layout input weights  (rows ordered r, z, n)
    w_hh : (3H, H)    PyTorch-layout hidden weights
    b_ih, b_hh : (3H,)
    Returns outputs (T, B, H) f32 and final hidden (1, B, H) f32.
    """
    H = hidden_size
    T, B = seq_len, batch

    B_pad, block_b = _batch_blocking(B, H)
    block_t, ragged = _time_blocking(T, block_b, H)
    T_pad = _round_up(T, block_t)

    x = x.astype(jnp.bfloat16)
    if (T_pad, B_pad) != (T, B):
        x = jnp.pad(x, ((0, T_pad - T), (0, B_pad - B), (0, 0)))

    # Packed weights: every matmul is (rows, H) @ (H, 3H) on the MXU.
    wih = w_ih.T.astype(jnp.bfloat16)                        # (H, 3H)
    whh = w_hh.T.astype(jnp.bfloat16)                        # (H, 3H)
    # Fold b_hr / b_hz into the chunk-level gate-input bias; only b_hn stays on
    # the per-step path (PyTorch: n = tanh(gi_n + r * (gh_n + b_hn))).
    b_ih = b_ih.astype(jnp.float32)
    b_hh = b_hh.astype(jnp.float32)
    bgi = (b_ih + jnp.concatenate(
        [b_hh[:2 * H], jnp.zeros((H,), jnp.float32)])).reshape(1, 3 * H)
    bhn = b_hh[2 * H:].reshape(1, H)

    kernel = functools.partial(
        _gru_kernel, hidden_size=H, block_t=block_t, block_b=block_b,
        seq_len=T, ragged=ragged, unroll=max(1, min(8, block_t)))

    grid_spec = pltpu.PrefetchScalarGridSpec(
        num_scalar_prefetch=0,
        grid=(B_pad // block_b, T_pad // block_t),            # (batch, time)
        in_specs=[
            pl.BlockSpec((block_t, block_b, H), lambda b, t: (t, b, 0)),
            _invariant_spec((H, 3 * H)),                      # W_ih^T
            _invariant_spec((H, 3 * H)),                      # W_hh^T
            _invariant_spec((1, 3 * H)),                      # folded gi bias
            _invariant_spec((1, H)),                          # b_hn
        ],
        out_specs=[
            pl.BlockSpec((block_t, block_b, H), lambda b, t: (t, b, 0)),
            # Constant block index over the trailing (sequential) time axis:
            # this output block stays resident in VMEM and doubles as the
            # hidden-state carry.  Last write per batch block == final hidden.
            pl.BlockSpec((block_b, H), lambda b, t: (b, 0)),
        ],
        scratch_shapes=[pltpu.VMEM((block_t * block_b, 3 * H), jnp.float32)],
    )

    vmem_limit = int(min(56 * 2 ** 20,
                         max(32 * 2 ** 20,
                             1.4 * _vmem_estimate(block_t, block_b, H))))

    outputs, h_last = pl.pallas_call(
        kernel,
        out_shape=(
            jax.ShapeDtypeStruct((T_pad, B_pad, H), jnp.float32),
            jax.ShapeDtypeStruct((B_pad, H), jnp.float32),
        ),
        grid_spec=grid_spec,
        compiler_params=pltpu.CompilerParams(
            # Batch blocks are independent (shard across TCs); time is the
            # sequential recurrence and must stay the trailing "arbitrary" axis.
            dimension_semantics=("parallel", "arbitrary"),
            vmem_limit_bytes=vmem_limit,
        ),
    )(x, wih, whh, bgi, bhn)

    return outputs[:T, :B], h_last[:B].reshape(1, B, H)


@functools.partial(jax.jit, static_argnames=("hidden_size",))
def gru_sentiment_forward(input_seq, emb_table, w_ih, w_hh, b_ih, b_hh, *,
                          hidden_size):
    T, B = input_seq.shape
    # Embedding lookup in bf16 (halves the gather + kernel-stream HBM bytes).
    # The input projection itself runs inside the kernel, so only H (not 3H)
    # columns per token are streamed from HBM into the recurrence.
    x = jnp.take(emb_table.astype(jnp.bfloat16), input_seq, axis=0)  # (T,B,H)
    outputs, hidden = gru_forward_pallas(
        x, w_ih, w_hh, b_ih, b_hh, hidden_size=hidden_size, seq_len=T, batch=B)
    # outputs[:, :, :H] + outputs[:, :, H:] is a no-op for a unidirectional GRU.
    return outputs, hidden


def _gru_reference(x, w_ih, w_hh, b_ih, b_hh):
    """Plain-JAX lax.scan reference matching torch.nn.GRU semantics (f32)."""
    T, B, H = x.shape

    def step(h, x_t):
        gi = x_t @ w_ih.T + b_ih
        gh = h @ w_hh.T + b_hh
        i_r, i_z, i_n = gi[:, :H], gi[:, H:2 * H], gi[:, 2 * H:]
        h_r, h_z, h_n = gh[:, :H], gh[:, H:2 * H], gh[:, 2 * H:]
        r = jax.nn.sigmoid(i_r + h_r)
        z = jax.nn.sigmoid(i_z + h_z)
        n = jnp.tanh(i_n + r * h_n)
        h_new = (1.0 - z) * n + z * h
        return h_new, h_new

    h0 = jnp.zeros((B, H), jnp.float32)
    h_last, outs = jax.lax.scan(step, h0, x)
    return outs, h_last[None]


if __name__ == "__main__":
    # Small, module-consistent shapes.
    T, B, H, V = 8, 4, 32, 64   # seq len, batch, hidden_size (= emb dim), vocab

    key = jax.random.PRNGKey(0)
    k_tok, k_emb, k_wih, k_whh, k_bih, k_bhh = jax.random.split(key, 6)

    input_seq = jax.random.randint(k_tok, (T, B), 0, V, dtype=jnp.int32)

    # Deterministic synthetic parameters (PyTorch shapes:
    # nn.Embedding(V, H), nn.GRU(H, H, 1)).
    scale = 1.0 / jnp.sqrt(jnp.float32(H))
    emb_table = jax.random.normal(k_emb, (V, H), jnp.float32) * 0.1
    w_ih = jax.random.uniform(k_wih, (3 * H, H), jnp.float32, -scale, scale)
    w_hh = jax.random.uniform(k_whh, (3 * H, H), jnp.float32, -scale, scale)
    b_ih = jax.random.uniform(k_bih, (3 * H,), jnp.float32, -scale, scale)
    b_hh = jax.random.uniform(k_bhh, (3 * H,), jnp.float32, -scale, scale)

    outputs, hidden = gru_sentiment_forward(
        input_seq, emb_table, w_ih, w_hh, b_ih, b_hh, hidden_size=H)
    jax.block_until_ready((outputs, hidden))

    assert outputs.shape == (T, B, H), outputs.shape
    assert hidden.shape == (1, B, H), hidden.shape

    # Cross-check against a plain-JAX f32 reference.  Slightly loose tolerance
    # because both the input and hidden paths run bf16 operands on the MXU
    # (f32 accumulation, f32 gate math and carry).
    embedded = jnp.take(emb_table, input_seq, axis=0)
    ref_out, ref_hid = _gru_reference(embedded, w_ih, w_hh, b_ih, b_hh)
    assert jnp.allclose(outputs, ref_out, atol=2e-2, rtol=2e-2), (
        float(jnp.max(jnp.abs(outputs - ref_out))))
    assert jnp.allclose(hidden, ref_hid, atol=2e-2, rtol=2e-2), (
        float(jnp.max(jnp.abs(hidden - ref_hid))))

    print("KERNEL_OK")
</pallas_src>

<mosaic_0001>
module attributes {stable_mosaic.version = 11 : i64} {
  func.func @_gru_kernel(%arg0: i32, %arg1: i32, %arg2: memref<8x8x32xbf16, #tpu.memory_space<vmem>>, %arg3: memref<32x96xbf16, #tpu.memory_space<vmem>>, %arg4: memref<32x96xbf16, #tpu.memory_space<vmem>>, %arg5: memref<1x96xf32, #tpu.memory_space<vmem>>, %arg6: memref<1x32xf32, #tpu.memory_space<vmem>>, %arg7: memref<8x8x32xf32, #tpu.memory_space<vmem>>, %arg8: memref<8x32xf32, #tpu.memory_space<vmem>>, %arg9: memref<64x96xf32, #tpu.memory_space<vmem>>) attributes {dimension_semantics = [#tpu.dimension_semantics<parallel>, #tpu.dimension_semantics<arbitrary>], iteration_bounds = array<i64: 1, 1>, scalar_prefetch = 0 : i64, scratch_operands = 1 : i64, tpu.core_type = #tpu.core_type<tc>, window_params = [{transform_indices = @transform_0, window_bounds = array<i64: 8, 8, 32>}, {pipeline_mode = #tpu.pipeline_mode<synchronous>, transform_indices = @transform_1, window_bounds = array<i64: 32, 96>}, {pipeline_mode = #tpu.pipeline_mode<synchronous>, transform_indices = @transform_2, window_bounds = array<i64: 32, 96>}, {pipeline_mode = #tpu.pipeline_mode<synchronous>, transform_indices = @transform_3, window_bounds = array<i64: 1, 96>}, {pipeline_mode = #tpu.pipeline_mode<synchronous>, transform_indices = @transform_4, window_bounds = array<i64: 1, 32>}, {transform_indices = @transform_5, window_bounds = array<i64: 8, 8, 32>}, {transform_indices = @transform_6, window_bounds = array<i64: 8, 32>}]} {
    %c0_i32 = arith.constant 0 : i32
    %0 = arith.cmpi eq, %arg1, %c0_i32 : i32
    %1 = arith.extui %0 : i1 to i32
    %c0_i32_0 = arith.constant 0 : i32
    %2 = arith.cmpi ne, %1, %c0_i32_0 : i32
    scf.if %2 {
      %cst_66 = arith.constant 0.000000e+00 : f32
      %249 = vector.broadcast %cst_66 : f32 to vector<8x32xf32>
      %c0_67 = arith.constant 0 : index
      %c0_68 = arith.constant 0 : index
      %250 = vector.load %arg8[%c0_67, %c0_68] : memref<8x32xf32, #tpu.memory_space<vmem>>, vector<8x32xf32>
      tpu.vector_store %arg8[%c0_67, %c0_68], %249 {strides = array<i32>} : memref<8x32xf32, #tpu.memory_space<vmem>>, vector<8x32xf32>,
    } else {
    }
    %c0 = arith.constant 0 : index
    %c0_1 = arith.constant 0 : index
    %c0_2 = arith.constant 0 : index
    %3 = vector.load %arg2[%c0, %c0_1, %c0_2] : memref<8x8x32xbf16, #tpu.memory_space<vmem>>, vector<8x8x32xbf16>
    %4 = vector.shape_cast %3 : vector<8x8x32xbf16> to vector<64x32xbf16>
    %c0_3 = arith.constant 0 : index
    %c0_4 = arith.constant 0 : index
    %5 = vector.load %arg3[%c0_3, %c0_4] : memref<32x96xbf16, #tpu.memory_space<vmem>>, vector<32x96xbf16>
    %cst = arith.constant dense<0.000000e+00> : vector<64x96xf32>
    %6 = tpu.matmul %4, %5, %cst {dimension_numbers = #tpu.dot_dimension_numbers<[1], [0], [0], [1], [0, 0, 1, 1], [], []>} : vector<64x32xbf16>, vector<32x96xbf16>, vector<64x96xf32> -> vector<64x96xf32>
    %c0_5 = arith.constant 0 : index
    %c0_6 = arith.constant 0 : index
    %7 = vector.load %arg5[%c0_5, %c0_6] : memref<1x96xf32, #tpu.memory_space<vmem>>, vector<1x96xf32>
    %8 = vector.broadcast %7 : vector<1x96xf32> to vector<64x96xf32>
    %9 = arith.addf %6, %8 : vector<64x96xf32>
    %c0_7 = arith.constant 0 : index
    %c0_8 = arith.constant 0 : index
    %10 = vector.load %arg9[%c0_7, %c0_8] : memref<64x96xf32, #tpu.memory_space<vmem>>, vector<64x96xf32>
    tpu.vector_store %arg9[%c0_7, %c0_8], %9 {strides = array<i32>} : memref<64x96xf32, #tpu.memory_space<vmem>>, vector<64x96xf32>,
    %c0_9 = arith.constant 0 : index
    %c0_10 = arith.constant 0 : index
    %11 = vector.load %arg4[%c0_9, %c0_10] : memref<32x96xbf16, #tpu.memory_space<vmem>>, vector<32x96xbf16>
    %c0_11 = arith.constant 0 : index
    %c0_12 = arith.constant 0 : index
    %12 = vector.load %arg6[%c0_11, %c0_12] : memref<1x32xf32, #tpu.memory_space<vmem>>, vector<1x32xf32>
    %13 = vector.shape_cast %12 : vector<1x32xf32> to vector<1x32xf32>
    %14 = vector.broadcast %13 : vector<1x32xf32> to vector<8x32xf32>
    %c0_13 = arith.constant 0 : index
    %c0_14 = arith.constant 0 : index
    %15 = vector.load %arg8[%c0_13, %c0_14] : memref<8x32xf32, #tpu.memory_space<vmem>>, vector<8x32xf32>
    %c0_i32_15 = arith.constant 0 : i32
    %c8_i32 = arith.constant 8 : i32
    %16 = arith.muli %c0_i32_15, %c8_i32 : i32
    %17 = tpu.assume_multiple %16, 8 : i32
    %18 = arith.index_cast %17 : i32 to index
    %c0_16 = arith.constant 0 : index
    %19 = vector.load %arg9[%18, %c0_16] : memref<64x96xf32, #tpu.memory_space<vmem>>, vector<8x96xf32>
    %20 = arith.truncf %15 : vector<8x32xf32> to vector<8x32xbf16>
    %cst_17 = arith.constant dense<0.000000e+00> : vector<8x96xf32>
    %21 = tpu.matmul %20, %11, %cst_17 {dimension_numbers = #tpu.dot_dimension_numbers<[1], [0], [0], [1], [0, 0, 1, 1], [], []>} : vector<8x32xbf16>, vector<32x96xbf16>, vector<8x96xf32> -> vector<8x96xf32>
    %22 = vector.extract_strided_slice %19 {offsets = [0, 0], sizes = [8, 64], strides = [1, 1]} : vector<8x96xf32> to vector<8x64xf32>
    %23 = vector.extract_strided_slice %21 {offsets = [0, 0], sizes = [8, 64], strides = [1, 1]} : vector<8x96xf32> to vector<8x64xf32>
    %24 = arith.addf %22, %23 : vector<8x64xf32>
    %25 = arith.negf %24 : vector<8x64xf32>
    %26 = math.exp %25 : vector<8x64xf32>
    %cst_18 = arith.constant 1.000000e+00 : f32
    %27 = vector.broadcast %cst_18 : f32 to vector<8x64xf32>
    %28 = arith.addf %27, %26 : vector<8x64xf32>
    %29 = arith.divf %27, %28 : vector<8x64xf32>
    %30 = vector.extract_strided_slice %29 {offsets = [0, 0], sizes = [8, 32], strides = [1, 1]} : vector<8x64xf32> to vector<8x32xf32>
    %31 = vector.extract_strided_slice %29 {offsets = [0, 32], sizes = [8, 32], strides = [1, 1]} : vector<8x64xf32> to vector<8x32xf32>
    %32 = vector.extract_strided_slice %19 {offsets = [0, 64], sizes = [8, 32], strides = [1, 1]} : vector<8x96xf32> to vector<8x32xf32>
    %33 = vector.extract_strided_slice %21 {offsets = [0, 64], sizes = [8, 32], strides = [1, 1]} : vector<8x96xf32> to vector<8x32xf32>
    %34 = arith.addf %33, %14 : vector<8x32xf32>
    %35 = arith.mulf %30, %34 : vector<8x32xf32>
    %36 = arith.addf %32, %35 : vector<8x32xf32>
    %37 = math.tanh %36 : vector<8x32xf32>
    %38 = arith.subf %15, %37 : vector<8x32xf32>
    %39 = arith.mulf %31, %38 : vector<8x32xf32>
    %40 = arith.addf %37, %39 : vector<8x32xf32>
    %41 = arith.index_cast %c0_i32_15 : i32 to index
    %c0_19 = arith.constant 0 : index
    %c0_20 = arith.constant 0 : index
    %42 = vector.load %arg7[%41, %c0_19, %c0_20] : memref<8x8x32xf32, #tpu.memory_space<vmem>>, vector<1x8x32xf32>
    %43 = vector.shape_cast %42 : vector<1x8x32xf32> to vector<8x32xf32>
    %44 = vector.shape_cast %40 : vector<8x32xf32> to vector<1x8x32xf32>
    tpu.vector_store %arg7[%41, %c0_19, %c0_20], %44 {strides = array<i32>} : memref<8x8x32xf32, #tpu.memory_space<vmem>>, vector<1x8x32xf32>,
    %c1_i32 = arith.constant 1 : i32
    %c8_i32_21 = arith.constant 8 : i32
    %45 = arith.muli %c1_i32, %c8_i32_21 : i32
    %46 = tpu.assume_multiple %45, 8 : i32
    %47 = arith.index_cast %46 : i32 to index
    %c0_22 = arith.constant 0 : index
    %48 = vector.load %arg9[%47, %c0_22] : memref<64x96xf32, #tpu.memory_space<vmem>>, vector<8x96xf32>
    %49 = arith.truncf %40 : vector<8x32xf32> to vector<8x32xbf16>
    %cst_23 = arith.constant dense<0.000000e+00> : vector<8x96xf32>
    %50 = tpu.matmul %49, %11, %cst_23 {dimension_numbers = #tpu.dot_dimension_numbers<[1], [0], [0], [1], [0, 0, 1, 1], [], []>} : vector<8x32xbf16>, vector<32x96xbf16>, vector<8x96xf32> -> vector<8x96xf32>
    %51 = vector.extract_strided_slice %48 {offsets = [0, 0], sizes = [8, 64], strides = [1, 1]} : vector<8x96xf32> to vector<8x64xf32>
    %52 = vector.extract_strided_slice %50 {offsets = [0, 0], sizes = [8, 64], strides = [1, 1]} : vector<8x96xf32> to vector<8x64xf32>
    %53 = arith.addf %51, %52 : vector<8x64xf32>
    %54 = arith.negf %53 : vector<8x64xf32>
    %55 = math.exp %54 : vector<8x64xf32>
    %cst_24 = arith.constant 1.000000e+00 : f32
    %56 = vector.broadcast %cst_24 : f32 to vector<8x64xf32>
    %57 = arith.addf %56, %55 : vector<8x64xf32>
    %58 = arith.divf %56, %57 : vector<8x64xf32>
    %59 = vector.extract_strided_slice %58 {offsets = [0, 0], sizes = [8, 32], strides = [1, 1]} : vector<8x64xf32> to vector<8x32xf32>
    %60 = vector.extract_strided_slice %58 {offsets = [0, 32], sizes = [8, 32], strides = [1, 1]} : vector<8x64xf32> to vector<8x32xf32>
    %61 = vector.extract_strided_slice %48 {offsets = [0, 64], sizes = [8, 32], strides = [1, 1]} : vector<8x96xf32> to vector<8x32xf32>
    %62 = vector.extract_strided_slice %50 {offsets = [0, 64], sizes = [8, 32], strides = [1, 1]} : vector<8x96xf32> to vector<8x32xf32>
    %63 = arith.addf %62, %14 : vector<8x32xf32>
    %64 = arith.mulf %59, %63 : vector<8x32xf32>
    %65 = arith.addf %61, %64 : vector<8x32xf32>
    %66 = math.tanh %65 : vector<8x32xf32>
    %67 = arith.subf %40, %66 : vector<8x32xf32>
    %68 = arith.mulf %60, %67 : vector<8x32xf32>
    %69 = arith.addf %66, %68 : vector<8x32xf32>
    %70 = arith.index_cast %c1_i32 : i32 to index
    %c0_25 = arith.constant 0 : index
    %c0_26 = arith.constant 0 : index
    %71 = vector.load %arg7[%70, %c0_25, %c0_26] : memref<8x8x32xf32, #tpu.memory_space<vmem>>, vector<1x8x32xf32>
    %72 = vector.shape_cast %71 : vector<1x8x32xf32> to vector<8x32xf32>
    %73 = vector.shape_cast %69 : vector<8x32xf32> to vector<1x8x32xf32>
    tpu.vector_store %arg7[%70, %c0_25, %c0_26], %73 {strides = array<i32>} : memref<8x8x32xf32, #tpu.memory_space<vmem>>, vector<1x8x32xf32>,
    %c2_i32 = arith.constant 2 : i32
    %c8_i32_27 = arith.constant 8 : i32
    %74 = arith.muli %c2_i32, %c8_i32_27 : i32
    %75 = tpu.assume_multiple %74, 8 : i32
    %76 = arith.index_cast %75 : i32 to index
    %c0_28 = arith.constant 0 : index
    %77 = vector.load %arg9[%76, %c0_28] : memref<64x96xf32, #tpu.memory_space<vmem>>, vector<8x96xf32>
    %78 = arith.truncf %69 : vector<8x32xf32> to vector<8x32xbf16>
    %cst_29 = arith.constant dense<0.000000e+00> : vector<8x96xf32>
    %79 = tpu.matmul %78, %11, %cst_29 {dimension_numbers = #tpu.dot_dimension_numbers<[1], [0], [0], [1], [0, 0, 1, 1], [], []>} : vector<8x32xbf16>, vector<32x96xbf16>, vector<8x96xf32> -> vector<8x96xf32>
    %80 = vector.extract_strided_slice %77 {offsets = [0, 0], sizes = [8, 64], strides = [1, 1]} : vector<8x96xf32> to vector<8x64xf32>
    %81 = vector.extract_strided_slice %79 {offsets = [0, 0], sizes = [8, 64], strides = [1, 1]} : vector<8x96xf32> to vector<8x64xf32>
    %82 = arith.addf %80, %81 : vector<8x64xf32>
    %83 = arith.negf %82 : vector<8x64xf32>
    %84 = math.exp %83 : vector<8x64xf32>
    %cst_30 = arith.constant 1.000000e+00 : f32
    %85 = vector.broadcast %cst_30 : f32 to vector<8x64xf32>
    %86 = arith.addf %85, %84 : vector<8x64xf32>
    %87 = arith.divf %85, %86 : vector<8x64xf32>
    %88 = vector.extract_strided_slice %87 {offsets = [0, 0], sizes = [8, 32], strides = [1, 1]} : vector<8x64xf32> to vector<8x32xf32>
    %89 = vector.extract_strided_slice %87 {offsets = [0, 32], sizes = [8, 32], strides = [1, 1]} : vector<8x64xf32> to vector<8x32xf32>
    %90 = vector.extract_strided_slice %77 {offsets = [0, 64], sizes = [8, 32], strides = [1, 1]} : vector<8x96xf32> to vector<8x32xf32>
    %91 = vector.extract_strided_slice %79 {offsets = [0, 64], sizes = [8, 32], strides = [1, 1]} : vector<8x96xf32> to vector<8x32xf32>
    %92 = arith.addf %91, %14 : vector<8x32xf32>
    %93 = arith.mulf %88, %92 : vector<8x32xf32>
    %94 = arith.addf %90, %93 : vector<8x32xf32>
    %95 = math.tanh %94 : vector<8x32xf32>
    %96 = arith.subf %69, %95 : vector<8x32xf32>
    %97 = arith.mulf %89, %96 : vector<8x32xf32>
    %98 = arith.addf %95, %97 : vector<8x32xf32>
    %99 = arith.index_cast %c2_i32 : i32 to index
    %c0_31 = arith.constant 0 : index
    %c0_32 = arith.constant 0 : index
    %100 = vector.load %arg7[%99, %c0_31, %c0_32] : memref<8x8x32xf32, #tpu.memory_space<vmem>>, vector<1x8x32xf32>
    %101 = vector.shape_cast %100 : vector<1x8x32xf32> to vector<8x32xf32>
    %102 = vector.shape_cast %98 : vector<8x32xf32> to vector<1x8x32xf32>
    tpu.vector_store %arg7[%99, %c0_31, %c0_32], %102 {strides = array<i32>} : memref<8x8x32xf32, #tpu.memory_space<vmem>>, vector<1x8x32xf32>,
    %c3_i32 = arith.constant 3 : i32
    %c8_i32_33 = arith.constant 8 : i32
    %103 = arith.muli %c3_i32, %c8_i32_33 : i32
    %104 = tpu.assume_multiple %103, 8 : i32
    %105 = arith.index_cast %104 : i32 to index
    %c0_34 = arith.constant 0 : index
    %106 = vector.load %arg9[%105, %c0_34] : memref<64x96xf32, #tpu.memory_space<vmem>>, vector<8x96xf32>
    %107 = arith.truncf %98 : vector<8x32xf32> to vector<8x32xbf16>
    %cst_35 = arith.constant dense<0.000000e+00> : vector<8x96xf32>
    %108 = tpu.matmul %107, %11, %cst_35 {dimension_numbers = #tpu.dot_dimension_numbers<[1], [0], [0], [1], [0, 0, 1, 1], [], []>} : vector<8x32xbf16>, vector<32x96xbf16>, vector<8x96xf32> -> vector<8x96xf32>
    %109 = vector.extract_strided_slice %106 {offsets = [0, 0], sizes = [8, 64], strides = [1, 1]} : vector<8x96xf32> to vector<8x64xf32>
    %110 = vector.extract_strided_slice %108 {offsets = [0, 0], sizes = [8, 64], strides = [1, 1]} : vector<8x96xf32> to vector<8x64xf32>
    %111 = arith.addf %109, %110 : vector<8x64xf32>
    %112 = arith.negf %111 : vector<8x64xf32>
    %113 = math.exp %112 : vector<8x64xf32>
    %cst_36 = arith.constant 1.000000e+00 : f32
    %114 = vector.broadcast %cst_36 : f32 to vector<8x64xf32>
    %115 = arith.addf %114, %113 : vector<8x64xf32>
    %116 = arith.divf %114, %115 : vector<8x64xf32>
    %117 = vector.extract_strided_slice %116 {offsets = [0, 0], sizes = [8, 32], strides = [1, 1]} : vector<8x64xf32> to vector<8x32xf32>
    %118 = vector.extract_strided_slice %116 {offsets = [0, 32], sizes = [8, 32], strides = [1, 1]} : vector<8x64xf32> to vector<8x32xf32>
    %119 = vector.extract_strided_slice %106 {offsets = [0, 64], sizes = [8, 32], strides = [1, 1]} : vector<8x96xf32> to vector<8x32xf32>
    %120 = vector.extract_strided_slice %108 {offsets = [0, 64], sizes = [8, 32], strides = [1, 1]} : vector<8x96xf32> to vector<8x32xf32>
    %121 = arith.addf %120, %14 : vector<8x32xf32>
    %122 = arith.mulf %117, %121 : vector<8x32xf32>
    %123 = arith.addf %119, %122 : vector<8x32xf32>
    %124 = math.tanh %123 : vector<8x32xf32>
    %125 = arith.subf %98, %124 : vector<8x32xf32>
    %126 = arith.mulf %118, %125 : vector<8x32xf32>
    %127 = arith.addf %124, %126 : vector<8x32xf32>
    %128 = arith.index_cast %c3_i32 : i32 to index
    %c0_37 = arith.constant 0 : index
    %c0_38 = arith.constant 0 : index
    %129 = vector.load %arg7[%128, %c0_37, %c0_38] : memref<8x8x32xf32, #tpu.memory_space<vmem>>, vector<1x8x32xf32>
    %130 = vector.shape_cast %129 : vector<1x8x32xf32> to vector<8x32xf32>
    %131 = vector.shape_cast %127 : vector<8x32xf32> to vector<1x8x32xf32>
    tpu.vector_store %arg7[%128, %c0_37, %c0_38], %131 {strides = array<i32>} : memref<8x8x32xf32, #tpu.memory_space<vmem>>, vector<1x8x32xf32>,
    %c4_i32 = arith.constant 4 : i32
    %c8_i32_39 = arith.constant 8 : i32
    %132 = arith.muli %c4_i32, %c8_i32_39 : i32
    %133 = tpu.assume_multiple %132, 8 : i32
    %134 = arith.index_cast %133 : i32 to index
    %c0_40 = arith.constant 0 : index
    %135 = vector.load %arg9[%134, %c0_40] : memref<64x96xf32, #tpu.memory_space<vmem>>, vector<8x96xf32>
    %136 = arith.truncf %127 : vector<8x32xf32> to vector<8x32xbf16>
    %cst_41 = arith.constant dense<0.000000e+00> : vector<8x96xf32>
    %137 = tpu.matmul %136, %11, %cst_41 {dimension_numbers = #tpu.dot_dimension_numbers<[1], [0], [0], [1], [0, 0, 1, 1], [], []>} : vector<8x32xbf16>, vector<32x96xbf16>, vector<8x96xf32> -> vector<8x96xf32>
    %138 = vector.extract_strided_slice %135 {offsets = [0, 0], sizes = [8, 64], strides = [1, 1]} : vector<8x96xf32> to vector<8x64xf32>
    %139 = vector.extract_strided_slice %137 {offsets = [0, 0], sizes = [8, 64], strides = [1, 1]} : vector<8x96xf32> to vector<8x64xf32>
    %140 = arith.addf %138, %139 : vector<8x64xf32>
    %141 = arith.negf %140 : vector<8x64xf32>
    %142 = math.exp %141 : vector<8x64xf32>
    %cst_42 = arith.constant 1.000000e+00 : f32
    %143 = vector.broadcast %cst_42 : f32 to vector<8x64xf32>
    %144 = arith.addf %143, %142 : vector<8x64xf32>
    %145 = arith.divf %143, %144 : vector<8x64xf32>
    %146 = vector.extract_strided_slice %145 {offsets = [0, 0], sizes = [8, 32], strides = [1, 1]} : vector<8x64xf32> to vector<8x32xf32>
    %147 = vector.extract_strided_slice %145 {offsets = [0, 32], sizes = [8, 32], strides = [1, 1]} : vector<8x64xf32> to vector<8x32xf32>
    %148 = vector.extract_strided_slice %135 {offsets = [0, 64], sizes = [8, 32], strides = [1, 1]} : vector<8x96xf32> to vector<8x32xf32>
    %149 = vector.extract_strided_slice %137 {offsets = [0, 64], sizes = [8, 32], strides = [1, 1]} : vector<8x96xf32> to vector<8x32xf32>
    %150 = arith.addf %149, %14 : vector<8x32xf32>
    %151 = arith.mulf %146, %150 : vector<8x32xf32>
    %152 = arith.addf %148, %151 : vector<8x32xf32>
    %153 = math.tanh %152 : vector<8x32xf32>
    %154 = arith.subf %127, %153 : vector<8x32xf32>
    %155 = arith.mulf %147, %154 : vector<8x32xf32>
    %156 = arith.addf %153, %155 : vector<8x32xf32>
    %157 = arith.index_cast %c4_i32 : i32 to index
    %c0_43 = arith.constant 0 : index
    %c0_44 = arith.constant 0 : index
    %158 = vector.load %arg7[%157, %c0_43, %c0_44] : memref<8x8x32xf32, #tpu.memory_space<vmem>>, vector<1x8x32xf32>
    %159 = vector.shape_cast %158 : vector<1x8x32xf32> to vector<8x32xf32>
    %160 = vector.shape_cast %156 : vector<8x32xf32> to vector<1x8x32xf32>
    tpu.vector_store %arg7[%157, %c0_43, %c0_44], %160 {strides = array<i32>} : memref<8x8x32xf32, #tpu.memory_space<vmem>>, vector<1x8x32xf32>,
    %c5_i32 = arith.constant 5 : i32
    %c8_i32_45 = arith.constant 8 : i32
    %161 = arith.muli %c5_i32, %c8_i32_45 : i32
    %162 = tpu.assume_multiple %161, 8 : i32
    %163 = arith.index_cast %162 : i32 to index
    %c0_46 = arith.constant 0 : index
    %164 = vector.load %arg9[%163, %c0_46] : memref<64x96xf32, #tpu.memory_space<vmem>>, vector<8x96xf32>
    %165 = arith.truncf %156 : vector<8x32xf32> to vector<8x32xbf16>
    %cst_47 = arith.constant dense<0.000000e+00> : vector<8x96xf32>
    %166 = tpu.matmul %165, %11, %cst_47 {dimension_numbers = #tpu.dot_dimension_numbers<[1], [0], [0], [1], [0, 0, 1, 1], [], []>} : vector<8x32xbf16>, vector<32x96xbf16>, vector<8x96xf32> -> vector<8x96xf32>
    %167 = vector.extract_strided_slice %164 {offsets = [0, 0], sizes = [8, 64], strides = [1, 1]} : vector<8x96xf32> to vector<8x64xf32>
    %168 = vector.extract_strided_slice %166 {offsets = [0, 0], sizes = [8, 64], strides = [1, 1]} : vector<8x96xf32> to vector<8x64xf32>
    %169 = arith.addf %167, %168 : vector<8x64xf32>
    %170 = arith.negf %169 : vector<8x64xf32>
    %171 = math.exp %170 : vector<8x64xf32>
    %cst_48 = arith.constant 1.000000e+00 : f32
    %172 = vector.broadcast %cst_48 : f32 to vector<8x64xf32>
    %173 = arith.addf %172, %171 : vector<8x64xf32>
    %174 = arith.divf %172, %173 : vector<8x64xf32>
    %175 = vector.extract_strided_slice %174 {offsets = [0, 0], sizes = [8, 32], strides = [1, 1]} : vector<8x64xf32> to vector<8x32xf32>
    %176 = vector.extract_strided_slice %174 {offsets = [0, 32], sizes = [8, 32], strides = [1, 1]} : vector<8x64xf32> to vector<8x32xf32>
    %177 = vector.extract_strided_slice %164 {offsets = [0, 64], sizes = [8, 32], strides = [1, 1]} : vector<8x96xf32> to vector<8x32xf32>
    %178 = vector.extract_strided_slice %166 {offsets = [0, 64], sizes = [8, 32], strides = [1, 1]} : vector<8x96xf32> to vector<8x32xf32>
    %179 = arith.addf %178, %14 : vector<8x32xf32>
    %180 = arith.mulf %175, %179 : vector<8x32xf32>
    %181 = arith.addf %177, %180 : vector<8x32xf32>
    %182 = math.tanh %181 : vector<8x32xf32>
    %183 = arith.subf %156, %182 : vector<8x32xf32>
    %184 = arith.mulf %176, %183 : vector<8x32xf32>
    %185 = arith.addf %182, %184 : vector<8x32xf32>
    %186 = arith.index_cast %c5_i32 : i32 to index
    %c0_49 = arith.constant 0 : index
    %c0_50 = arith.constant 0 : index
    %187 = vector.load %arg7[%186, %c0_49, %c0_50] : memref<8x8x32xf32, #tpu.memory_space<vmem>>, vector<1x8x32xf32>
    %188 = vector.shape_cast %187 : vector<1x8x32xf32> to vector<8x32xf32>
    %189 = vector.shape_cast %185 : vector<8x32xf32> to vector<1x8x32xf32>
    tpu.vector_store %arg7[%186, %c0_49, %c0_50], %189 {strides = array<i32>} : memref<8x8x32xf32, #tpu.memory_space<vmem>>, vector<1x8x32xf32>,
    %c6_i32 = arith.constant 6 : i32
    %c8_i32_51 = arith.constant 8 : i32
    %190 = arith.muli %c6_i32, %c8_i32_51 : i32
    %191 = tpu.assume_multiple %190, 8 : i32
    %192 = arith.index_cast %191 : i32 to index
    %c0_52 = arith.constant 0 : index
    %193 = vector.load %arg9[%192, %c0_52] : memref<64x96xf32, #tpu.memory_space<vmem>>, vector<8x96xf32>
    %194 = arith.truncf %185 : vector<8x32xf32> to vector<8x32xbf16>
    %cst_53 = arith.constant dense<0.000000e+00> : vector<8x96xf32>
    %195 = tpu.matmul %194, %11, %cst_53 {dimension_numbers = #tpu.dot_dimension_numbers<[1], [0], [0], [1], [0, 0, 1, 1], [], []>} : vector<8x32xbf16>, vector<32x96xbf16>, vector<8x96xf32> -> vector<8x96xf32>
    %196 = vector.extract_strided_slice %193 {offsets = [0, 0], sizes = [8, 64], strides = [1, 1]} : vector<8x96xf32> to vector<8x64xf32>
    %197 = vector.extract_strided_slice %195 {offsets = [0, 0], sizes = [8, 64], strides = [1, 1]} : vector<8x96xf32> to vector<8x64xf32>
    %198 = arith.addf %196, %197 : vector<8x64xf32>
    %199 = arith.negf %198 : vector<8x64xf32>
    %200 = math.exp %199 : vector<8x64xf32>
    %cst_54 = arith.constant 1.000000e+00 : f32
    %201 = vector.broadcast %cst_54 : f32 to vector<8x64xf32>
    %202 = arith.addf %201, %200 : vector<8x64xf32>
    %203 = arith.divf %201, %202 : vector<8x64xf32>
    %204 = vector.extract_strided_slice %203 {offsets = [0, 0], sizes = [8, 32], strides = [1, 1]} : vector<8x64xf32> to vector<8x32xf32>
    %205 = vector.extract_strided_slice %203 {offsets = [0, 32], sizes = [8, 32], strides = [1, 1]} : vector<8x64xf32> to vector<8x32xf32>
    %206 = vector.extract_strided_slice %193 {offsets = [0, 64], sizes = [8, 32], strides = [1, 1]} : vector<8x96xf32> to vector<8x32xf32>
    %207 = vector.extract_strided_slice %195 {offsets = [0, 64], sizes = [8, 32], strides = [1, 1]} : vector<8x96xf32> to vector<8x32xf32>
    %208 = arith.addf %207, %14 : vector<8x32xf32>
    %209 = arith.mulf %204, %208 : vector<8x32xf32>
    %210 = arith.addf %206, %209 : vector<8x32xf32>
    %211 = math.tanh %210 : vector<8x32xf32>
    %212 = arith.subf %185, %211 : vector<8x32xf32>
    %213 = arith.mulf %205, %212 : vector<8x32xf32>
    %214 = arith.addf %211, %213 : vector<8x32xf32>
    %215 = arith.index_cast %c6_i32 : i32 to index
    %c0_55 = arith.constant 0 : index
    %c0_56 = arith.constant 0 : index
    %216 = vector.load %arg7[%215, %c0_55, %c0_56] : memref<8x8x32xf32, #tpu.memory_space<vmem>>, vector<1x8x32xf32>
    %217 = vector.shape_cast %216 : vector<1x8x32xf32> to vector<8x32xf32>
    %218 = vector.shape_cast %214 : vector<8x32xf32> to vector<1x8x32xf32>
    tpu.vector_store %arg7[%215, %c0_55, %c0_56], %218 {strides = array<i32>} : memref<8x8x32xf32, #tpu.memory_space<vmem>>, vector<1x8x32xf32>,
    %c7_i32 = arith.constant 7 : i32
    %c8_i32_57 = arith.constant 8 : i32
    %219 = arith.muli %c7_i32, %c8_i32_57 : i32
    %220 = tpu.assume_multiple %219, 8 : i32
    %221 = arith.index_cast %220 : i32 to index
    %c0_58 = arith.constant 0 : index
    %222 = vector.load %arg9[%221, %c0_58] : memref<64x96xf32, #tpu.memory_space<vmem>>, vector<8x96xf32>
    %223 = arith.truncf %214 : vector<8x32xf32> to vector<8x32xbf16>
    %cst_59 = arith.constant dense<0.000000e+00> : vector<8x96xf32>
    %224 = tpu.matmul %223, %11, %cst_59 {dimension_numbers = #tpu.dot_dimension_numbers<[1], [0], [0], [1], [0, 0, 1, 1], [], []>} : vector<8x32xbf16>, vector<32x96xbf16>, vector<8x96xf32> -> vector<8x96xf32>
    %225 = vector.extract_strided_slice %222 {offsets = [0, 0], sizes = [8, 64], strides = [1, 1]} : vector<8x96xf32> to vector<8x64xf32>
    %226 = vector.extract_strided_slice %224 {offsets = [0, 0], sizes = [8, 64], strides = [1, 1]} : vector<8x96xf32> to vector<8x64xf32>
    %227 = arith.addf %225, %226 : vector<8x64xf32>
    %228 = arith.negf %227 : vector<8x64xf32>
    %229 = math.exp %228 : vector<8x64xf32>
    %cst_60 = arith.constant 1.000000e+00 : f32
    %230 = vector.broadcast %cst_60 : f32 to vector<8x64xf32>
    %231 = arith.addf %230, %229 : vector<8x64xf32>
    %232 = arith.divf %230, %231 : vector<8x64xf32>
    %233 = vector.extract_strided_slice %232 {offsets = [0, 0], sizes = [8, 32], strides = [1, 1]} : vector<8x64xf32> to vector<8x32xf32>
    %234 = vector.extract_strided_slice %232 {offsets = [0, 32], sizes = [8, 32], strides = [1, 1]} : vector<8x64xf32> to vector<8x32xf32>
    %235 = vector.extract_strided_slice %222 {offsets = [0, 64], sizes = [8, 32], strides = [1, 1]} : vector<8x96xf32> to vector<8x32xf32>
    %236 = vector.extract_strided_slice %224 {offsets = [0, 64], sizes = [8, 32], strides = [1, 1]} : vector<8x96xf32> to vector<8x32xf32>
    %237 = arith.addf %236, %14 : vector<8x32xf32>
    %238 = arith.mulf %233, %237 : vector<8x32xf32>
    %239 = arith.addf %235, %238 : vector<8x32xf32>
    %240 = math.tanh %239 : vector<8x32xf32>
    %241 = arith.subf %214, %240 : vector<8x32xf32>
    %242 = arith.mulf %234, %241 : vector<8x32xf32>
    %243 = arith.addf %240, %242 : vector<8x32xf32>
    %244 = arith.index_cast %c7_i32 : i32 to index
    %c0_61 = arith.constant 0 : index
    %c0_62 = arith.constant 0 : index
    %245 = vector.load %arg7[%244, %c0_61, %c0_62] : memref<8x8x32xf32, #tpu.memory_space<vmem>>, vector<1x8x32xf32>
    %246 = vector.shape_cast %245 : vector<1x8x32xf32> to vector<8x32xf32>
    %247 = vector.shape_cast %243 : vector<8x32xf32> to vector<1x8x32xf32>
    tpu.vector_store %arg7[%244, %c0_61, %c0_62], %247 {strides = array<i32>} : memref<8x8x32xf32, #tpu.memory_space<vmem>>, vector<1x8x32xf32>,
    %c8_i32_63 = arith.constant 8 : i32
    %c0_64 = arith.constant 0 : index
    %c0_65 = arith.constant 0 : index
    %248 = vector.load %arg8[%c0_64, %c0_65] : memref<8x32xf32, #tpu.memory_space<vmem>>, vector<8x32xf32>
    tpu.vector_store %arg8[%c0_64, %c0_65], %243 {strides = array<i32>} : memref<8x32xf32, #tpu.memory_space<vmem>>, vector<8x32xf32>,
    return
  }
  func.func @transform_0(%arg0: i32, %arg1: i32) -> (i32, i32, i32) {
    %c0_i32 = arith.constant 0 : i32
    %c0_i32_0 = arith.constant 0 : i32
    return %arg1, %arg0, %c0_i32 : i32, i32, i32
  }
  func.func @transform_1(%arg0: i32, %arg1: i32) -> (i32, i32) {
    %c0_i32 = arith.constant 0 : i32
    %c0_i32_0 = arith.constant 0 : i32
    %c0_i32_1 = arith.constant 0 : i32
    return %c0_i32, %c0_i32_0 : i32, i32
  }
  func.func @transform_2(%arg0: i32, %arg1: i32) -> (i32, i32) {
    %c0_i32 = arith.constant 0 : i32
    %c0_i32_0 = arith.constant 0 : i32
    %c0_i32_1 = arith.constant 0 : i32
    return %c0_i32, %c0_i32_0 : i32, i32
  }
  func.func @transform_3(%arg0: i32, %arg1: i32) -> (i32, i32) {
    %c0_i32 = arith.constant 0 : i32
    %c0_i32_0 = arith.constant 0 : i32
    %c0_i32_1 = arith.constant 0 : i32
    return %c0_i32, %c0_i32_0 : i32, i32
  }
  func.func @transform_4(%arg0: i32, %arg1: i32) -> (i32, i32) {
    %c0_i32 = arith.constant 0 : i32
    %c0_i32_0 = arith.constant 0 : i32
    %c0_i32_1 = arith.constant 0 : i32
    return %c0_i32, %c0_i32_0 : i32, i32
  }
  func.func @transform_5(%arg0: i32, %arg1: i32) -> (i32, i32, i32) {
    %c0_i32 = arith.constant 0 : i32
    %c0_i32_0 = arith.constant 0 : i32
    return %arg1, %arg0, %c0_i32 : i32, i32, i32
  }
  func.func @transform_6(%arg0: i32, %arg1: i32) -> (i32, i32) {
    %c0_i32 = arith.constant 0 : i32
    %c0_i32_0 = arith.constant 0 : i32
    return %arg0, %c0_i32 : i32, i32
  }
}

</mosaic_0001>

<bundles_post_ra>
// kernel: gru_sentiment_forward.1
= control target key start
LH: loop header
LB: loop body
LE: loop exit
PB: predicated region body
PF: predicated region fallthrough
CT: control target
= control target key end

     0   :  { %vm27_vm0 = vcmask 261120   ;;  %v1085_v0 = vmov 0.0   ;;  %vm1086_vm1 = vmmov 0   ;;  %s1087_s13 = smov 64   ;;  %vm158_vm2 = vcmask 785408   ;;  %s1089_s15 = smov 96   ;;  %s1376_s1 = inlined_call_operand.vmem [shape: bf16[32,96], index: 1, kind: input, shape index: {}]   ;;  %s1377_s2 = inlined_call_operand.vmem [shape: bf16[32,96], index: 2, kind: input, shape index: {}]   ;;  %s1378_s6 = inlined_call_operand.vmem [shape: f32[8,32], index: 6, kind: output, shape index: {1}]   ;;  %s1379_s0 = inlined_call_operand.vmem [shape: bf16[8,8,32], index: 0, kind: input, shape index: {}]   ;;  %s1380_s4 = inlined_call_operand.vmem [shape: f32[1,32], index: 4, kind: input, shape index: {}]   ;;  %s1381_s3 = inlined_call_operand.vmem [shape: f32[1,96], index: 3, kind: input, shape index: {}]   ;;  %s1382_s5 = inlined_call_operand.vmem [shape: f32[8,8,32], index: 5, kind: output, shape index: {0}]  }
   0x1   :  { %960 = vmatprep.subr.bf16.mxu1 %v1085_v0  ;;  %v1029_v1 = vld [vmem:[%s1376_s1 + $0x8] sm:$0xff]   ;;  %964 = vmatprep.mubr.msk.bf16.mxu1 %vm1086_vm1, %v1085_v0  ;;  %28 = vst.msk [vmem:[%s1378_s6] sm:$0xff] %vm27_vm0, %v1085_v0  ;;  %v1031_v3 = vld [vmem:[%s1376_s1] sm:$0xff]   ;;  %v1035_v61 = vld [vmem:[%s1379_s0 + $0x10] sm:$0xff]  }
   0x2   :  { %v1139_v2 = vld [vmem:[%s1377_s2 + $0x8] sm:$0xff]   ;;  %948 = vmatprep.subr.bf16.mxu0 %v1029_v1  ;;  %v1148_v4 = vld [vmem:[%s1377_s2] sm:$0xff]   ;;  %v1036_v62 = vld [vmem:[%s1379_s0 + $0x18] sm:$0xff]  }
   0x3   :  { %961 = vmatpush3.bf16.msra.mxu1 %v1139_v2  ;;  %949 = vmatpush3.bf16.msra.mxu0 %v1029_v1  ;;  %v1033_v5 = vld [vmem:[%s1379_s0] sm:$0xff]   ;;  %v1034_v6 = vld [vmem:[%s1379_s0 + $0x8] sm:$0xff]  }
   0x4   :  { %962 = vmatprep.subr.bf16.mxu1 %v1085_v0  ;;  %950 = vmatprep.subr.bf16.mxu0 %v1031_v3  ;;  %v892_v7 = vld [vmem:[%s1380_s4] ss:$0 sm:$0xff] }
   0x5   :  { %952 = vmatprep.mubr.msk.bf16.mxu0 %vm27_vm0, %v1033_v5  ;;  %242 = vrot.lane.b32.xlu0 %v892_v7, %s1087_s13  ;;  %v1185_v13 = vld [vmem:[%s1381_s3] ss:$0 sm:$0xff]  ;;  %s1088_s3 = smov 32  }
   0x7   :  { %963 = vmatpush3.bf16.msra.mxu1 %v1148_v4  ;;  %951 = vmatpush3.bf16.msra.mxu0 %v1031_v3 }
   0x8   :  { %v177_v8 = vld [vmem:[%s1378_s6] sm:$0xff]  ;;  %968 = vmatprep.subr.bf16.mxu1 %v1085_v0  ;;  %976 = vmatprep.subr.bf16.mxu0 %v1085_v0 }
   0x9   :  { %v179_v9 = vpack.c.bf16 %v177_v8, %v177_v8 }
   0xa   :  { %953 = vmatmul.mubr.msk.bf16.vlgmr.msra.gmra.mxu0 %vm27_vm0, %v1034_v6 }
   0xb   :  { %965 = vmatmul.mubr.msk.bf16.vlgmr.msra.gmra.mxu1 %vm27_vm0, %v179_v9  ;;  %977 = vmatpush3.bf16.msra.mxu0 %v1139_v2 }
   0xc   :  { %969 = vmatpush3.bf16.msra.mxu1 %v1139_v2  ;;  %972 = vmatprep.mubr.msk.bf16.mxu1 %vm1086_vm1, %v1085_v0 }
   0xd   :  { %970 = vmatprep.subr.bf16.mxu1 %v1085_v0  ;;  %978 = vmatprep.subr.bf16.mxu0 %v1085_v0 }
   0xe   :  { %956 = vmatprep.mubr.msk.bf16.mxu0 %vm27_vm0, %v1035_v61 }
   0xf   :  { %979 = vmatpush3.bf16.msra.mxu0 %v1148_v4 }
  0x10   :  { %971 = vmatpush3.bf16.msra.mxu1 %v1148_v4  ;;  %992 = vmatprep.subr.bf16.mxu0 %v1085_v0 }
  0x11   :  { %984 = vmatprep.subr.bf16.mxu1 %v1085_v0 }
  0x12   :  { %957 = vmatmul.mubr.msk.bf16.gmra.mxu0 %vm27_vm0, %v1036_v62 }
  0x13   :  { %980 = vmatprep.mubr.msk.bf16.mxu0 %vm1086_vm1, %v1085_v0 }
  0x77   :  { %v1180_v10 = vpop.permute.xlu0 %242 }
  0xca   :  { %v954_v12 = vpop.f32.mrf.mxu0 }
  0xcb   :  { %v229_v11 = vpop.f32.mrf.mxu1  ;;  %v136_v15 = vadd.f32 %v954_v12, %v1185_v13 }
  0xcc   :  { %v245_v14 = vadd.f32 %v1180_v10, %v229_v11  ;;  %v127_v17 = vpop.f32.mrf.mxu0 }
  0xcd   :  { %v966_v16 = vpop.f32.mrf.mxu1  ;;  %161 = vst.msk [vmem:[#allocation2 + $0x10] sm:$0xff] %vm158_vm2, %v136_v15  ;;  %v128_v18 = vadd.f32 %v1185_v13, %v127_v17 }
  0xce   :  { %247 = vrot.lane.b32.xlu0 %v245_v14, %s1087_s13  ;;  %v955_v20 = vpop.f32.mrf.mxu0 }
  0xcf   :  { %v232_v19 = vpop.f32.mrf.mxu1  ;;  %159 = vst.msk [vmem:[#allocation2] sm:$0xff] %vm158_vm2, %v128_v18  ;;  %v139_v21 = vadd.f32 %v955_v20, %v1185_v13 }
  0xd0   :  { %v130_v23 = vpop.f32.mrf.mxu0 }
  0xd1   :  { %v967_v22 = vpop.f32.mrf.mxu1  ;;  %162 = vst.msk [vmem:[#allocation2 + $0x18] sm:$0xff] %vm158_vm2, %v139_v21  ;;  %v131_v24 = vadd.f32 %v1185_v13, %v130_v23 }
  0xd2   :  { %v958_v7 = vpop.f32.mrf.mxu0 }
  0xd3   :  { %160 = vst.msk [vmem:[#allocation2 + $0x8] sm:$0xff] %vm158_vm2, %v131_v24 }
  0xd4   :  { %v143_v9 = vpop.f32.mrf.mxu0  ;;  %v363_v22 = vld [vmem:[#allocation2 + $0x10] sm:$0xff] }
  0xd6   :  { %v178_v25 = vld [vmem:[#allocation2] sm:$0xff]  ;;  %v959_v12 = vpop.f32.mrf.mxu0 }
  0xd7   :  { %v235_v26 = vadd.f32 %v229_v11, %v178_v25  ;;  %v144_v11 = vadd.f32 %v1185_v13, %v143_v9  ;;  %v155_v14 = vadd.f32 %v959_v12, %v1185_v13 }
  0xd8   :  { %v146_v15 = vpop.f32.mrf.mxu0 }
  0xd9   :  { %v896_v27 = vmul.f32 -1.442695, %v235_v26  ;;  %163 = vst.msk [vmem:[#allocation2 + $0x20] sm:$0xff] %vm158_vm2, %v144_v11  ;;  %166 = vst.msk [vmem:[#allocation2 + $0x38] sm:$0xff] %vm158_vm2, %v155_v14  ;;  %v147_v16 = vadd.f32 %v1185_v13, %v146_v15 }
  0xda   :  { %v278_v49 = vld [vmem:[#allocation2 + $0x8] sm:$0xff] }
  0xdb   :  { %1037 = vpow2.f32 %v896_v27  ;;  %164 = vst.msk [vmem:[#allocation2 + $0x28] sm:$0xff] %vm158_vm2, %v147_v16 }
  0xe0   :  { %v533_v9 = vld [vmem:[#allocation2 + $0x20] sm:$0xff] }
  0xe8   :  { %v1038_v28 = vpop.eup %1037 }
  0xe9   :  { %v239_v29 = vadd.f32 1.0, %v1038_v28 }
  0xeb   :  { %1039 = vrcp.f32 %v239_v29 }
  0xf8   :  { %v1040_v30 = vpop.eup %1039 }
 0x140   :  { %v248_v31 = vpop.permute.xlu0 %247 }
 0x141   :  { %v250_v32 = vmul.f32 %v1040_v30, %v248_v31 }
 0x143   :  { %252 = vrot.lane.b32.xlu1 %v250_v32, %s1087_s13 }
 0x1b5   :  { %v253_v33 = vpop.permute.xlu1 %252 }
 0x1b6   :  { %v255_v34 = vadd.f32 %v253_v33, %v178_v25 }
 0x1b8   :  { %1041 = vtanh.f32 %v255_v34 }
 0x1c5   :  { %v1042_v35 = vpop.eup %1041 }
 0x1c6   :  { %258 = vrot.lane.b32.xlu1 %v1042_v35, %s1087_s13 }
 0x238   :  { %v259_v36 = vpop.permute.xlu1 %258 }
 0x239   :  { %v261_v37 = vsub.f32 %v177_v8, %v259_v36  ;;  %v152_v8 = vadd.f32 %v958_v7, %v1185_v13 }
 0x23b   :  { %263 = vrot.lane.b32.xlu0 %v261_v37, %s1088_s3  ;;  %165 = vst.msk [vmem:[#allocation2 + $0x30] sm:$0xff] %vm158_vm2, %v152_v8 }
 0x2ad   :  { %v264_v38 = vpop.permute.xlu0 %263 }
 0x2ae   :  { %v266_v39 = vmul.f32 %v1040_v30, %v264_v38 }
 0x2b0   :  { %268 = vrot.lane.b32.xlu1 %v266_v39, %s1088_s3 }
 0x322   :  { %v269_v40 = vpop.permute.xlu1 %268 }
 0x323   :  { %v1201_v41 = vadd.f32 %v1042_v35, %v269_v40 }
 0x325   :  { %v279_v42 = vpack.c.bf16 %v1201_v41, %v1201_v41 }
 0x327   :  { %281 = vrot.lane.b32.xlu0 %v279_v42, %s1087_s13 }
 0x399   :  { %v282_v43 = vpop.permute.xlu0 %281 }
 0x39a   :  { %973 = vmatmul.mubr.msk.bf16.vlgmr.msra.gmra.mxu1 %vm27_vm0, %v282_v43 }
 0x39b   :  { %985 = vmatpush3.bf16.msra.mxu1 %v1139_v2  ;;  %988 = vmatprep.mubr.msk.bf16.mxu1 %vm1086_vm1, %v1085_v0 }
 0x39c   :  { %986 = vmatprep.subr.bf16.mxu1 %v1085_v0 }
 0x39f   :  { %987 = vmatpush3.bf16.msra.mxu1 %v1148_v4 }
 0x3a0   :  { %1000 = vmatprep.subr.bf16.mxu1 %v1085_v0 }
 0x45a   :  { %v320_v44 = vpop.f32.mrf.mxu1 }
 0x45b   :  { %v333_v45 = vadd.f32 %v320_v44, %v1180_v10  ;;  %v326_v50 = vadd.f32 %v320_v44, %v278_v49 }
 0x45c   :  { %v974_v46 = vpop.f32.mrf.mxu1 }
 0x45d   :  { %335 = vrot.lane.b32.xlu1 %v333_v45, %s1087_s13  ;;  %v898_v51 = vmul.f32 -1.442695, %v326_v50  ;;  %v448_v46 = vld [vmem:[#allocation2 + $0x18] sm:$0xff] }
 0x45e   :  { %v323_v47 = vpop.f32.mrf.mxu1 }
 0x45f   :  { %1043 = vpow2.f32 %v898_v51 }
 0x460   :  { %v975_v48 = vpop.f32.mrf.mxu1 }
 0x46c   :  { %v1044_v52 = vpop.eup %1043 }
 0x46d   :  { %v330_v53 = vadd.f32 1.0, %v1044_v52 }
 0x46f   :  { %1045 = vrcp.f32 %v330_v53 }
 0x47c   :  { %v1046_v54 = vpop.eup %1045 }
 0x4cf   :  { %v336_v55 = vpop.permute.xlu1 %335 }
 0x4d0   :  { %v338_v56 = vmul.f32 %v1046_v54, %v336_v55 }
 0x4d2   :  { %340 = vrot.lane.b32.xlu0 %v338_v56, %s1087_s13 }
 0x544   :  { %v341_v57 = vpop.permute.xlu0 %340 }
 0x545   :  { %v343_v58 = vadd.f32 %v341_v57, %v278_v49 }
 0x547   :  { %1047 = vtanh.f32 %v343_v58 }
 0x554   :  { %v1048_v59 = vpop.eup %1047 }
 0x555   :  { %v345_v60 = vsub.f32 %v1201_v41, %v1048_v59 }
 0x557   :  { %347 = vrot.lane.b32.xlu1 %v345_v60, %s1089_s15 }
 0x5c9   :  { %v348_v63 = vpop.permute.xlu1 %347 }
 0x5ca   :  { %v350_v1 = vmul.f32 %v1046_v54, %v348_v63 }
 0x5cc   :  { %352 = vrot.lane.b32.xlu0 %v350_v1, %s1088_s3 }
 0x63e   :  { %v353_v3 = vpop.permute.xlu0 %352 }
 0x63f   :  { %v1229_v5 = vadd.f32 %v1048_v59, %v353_v3 }
 0x641   :  { %v364_v6 = vpack.c.bf16 %v1229_v5, %v1229_v5 }
 0x643   :  { %366 = vrot.lane.b32.xlu1 %v364_v6, %s1087_s13 }
 0x6b5   :  { %v367_v17 = vpop.permute.xlu1 %366 }
 0x6b6   :  { %981 = vmatmul.mubr.msk.bf16.vlgmr.msra.gmra.mxu0 %vm27_vm0, %v367_v17 }
 0x6b7   :  { %993 = vmatpush3.bf16.msra.mxu0 %v1139_v2  ;;  %996 = vmatprep.mubr.msk.bf16.mxu0 %vm1086_vm1, %v1085_v0 }
 0x6b8   :  { %994 = vmatprep.subr.bf16.mxu0 %v1085_v0 }
 0x6bb   :  { %995 = vmatpush3.bf16.msra.mxu0 %v1148_v4 }
 0x6bc   :  { %1008 = vmatprep.subr.bf16.mxu0 %v1085_v0 }
 0x776   :  { %v405_v18 = vpop.f32.mrf.mxu0 }
 0x777   :  { %v418_v19 = vadd.f32 %v405_v18, %v1180_v10  ;;  %v411_v23 = vadd.f32 %v405_v18, %v363_v22 }
 0x778   :  { %v982_v13 = vpop.f32.mrf.mxu0 }
 0x779   :  { %420 = vrot.lane.b32.xlu0 %v418_v19, %s1087_s13  ;;  %v901_v24 = vmul.f32 -1.442695, %v411_v23 }
 0x77a   :  { %v408_v20 = vpop.f32.mrf.mxu0 }
 0x77b   :  { %1049 = vpow2.f32 %v901_v24 }
 0x77c   :  { %v983_v21 = vpop.f32.mrf.mxu0 }
 0x788   :  { %v1050_v25 = vpop.eup %1049 }
 0x789   :  { %v415_v26 = vadd.f32 1.0, %v1050_v25 }
 0x78b   :  { %1051 = vrcp.f32 %v415_v26 }
 0x798   :  { %v1052_v27 = vpop.eup %1051 }
 0x7eb   :  { %v421_v28 = vpop.permute.xlu0 %420 }
 0x7ec   :  { %v423_v29 = vmul.f32 %v1052_v27, %v421_v28 }
 0x7ee   :  { %425 = vrot.lane.b32.xlu1 %v423_v29, %s1087_s13 }
 0x860   :  { %v426_v30 = vpop.permute.xlu1 %425 }
 0x861   :  { %v428_v31 = vadd.f32 %v426_v30, %v363_v22 }
 0x863   :  { %1053 = vtanh.f32 %v428_v31 }
 0x870   :  { %v1054_v32 = vpop.eup %1053 }
 0x871   :  { %v430_v33 = vsub.f32 %v1229_v5, %v1054_v32 }
 0x873   :  { %432 = vrot.lane.b32.xlu0 %v430_v33, %s1089_s15  ;;  %v618_v33 = vld [vmem:[#allocation2 + $0x28] sm:$0xff] }
 0x8e5   :  { %v433_v34 = vpop.permute.xlu0 %432 }
 0x8e6   :  { %v435_v35 = vmul.f32 %v1052_v27, %v433_v34 }
 0x8e8   :  { %437 = vrot.lane.b32.xlu1 %v435_v35, %s1088_s3 }
 0x95a   :  { %v438_v36 = vpop.permute.xlu1 %437 }
 0x95b   :  { %v1255_v37 = vadd.f32 %v1054_v32, %v438_v36 }
 0x95d   :  { %v449_v38 = vpack.c.bf16 %v1255_v37, %v1255_v37 }
 0x95f   :  { %451 = vrot.lane.b32.xlu0 %v449_v38, %s1087_s13 }
 0x9d1   :  { %v452_v39 = vpop.permute.xlu0 %451 }
 0x9d2   :  { %989 = vmatmul.mubr.msk.bf16.vlgmr.msra.gmra.mxu1 %vm27_vm0, %v452_v39 }
 0x9d3   :  { %1001 = vmatpush3.bf16.msra.mxu1 %v1139_v2  ;;  %1004 = vmatprep.mubr.msk.bf16.mxu1 %vm1086_vm1, %v1085_v0 }
 0x9d4   :  { %1002 = vmatprep.subr.bf16.mxu1 %v1085_v0 }
 0x9d7   :  { %1003 = vmatpush3.bf16.msra.mxu1 %v1148_v4 }
 0x9d8   :  { %1016 = vmatprep.subr.bf16.mxu1 %v1085_v0 }
 0xa92   :  { %v490_v40 = vpop.f32.mrf.mxu1 }
 0xa93   :  { %v503_v42 = vadd.f32 %v490_v40, %v1180_v10  ;;  %v496_v47 = vadd.f32 %v490_v40, %v448_v46 }
 0xa94   :  { %v990_v43 = vpop.f32.mrf.mxu1 }
 0xa95   :  { %505 = vrot.lane.b32.xlu1 %v503_v42, %s1087_s13  ;;  %v904_v48 = vmul.f32 -1.442695, %v496_v47 }
 0xa96   :  { %v493_v44 = vpop.f32.mrf.mxu1 }
 0xa97   :  { %1055 = vpow2.f32 %v904_v48 }
 0xa98   :  { %v991_v45 = vpop.f32.mrf.mxu1 }
 0xaa4   :  { %v1056_v49 = vpop.eup %1055 }
 0xaa5   :  { %v500_v50 = vadd.f32 1.0, %v1056_v49 }
 0xaa7   :  { %1057 = vrcp.f32 %v500_v50 }
 0xab4   :  { %v1058_v51 = vpop.eup %1057 }
 0xb07   :  { %v506_v52 = vpop.permute.xlu1 %505 }
 0xb08   :  { %v508_v53 = vmul.f32 %v1058_v51, %v506_v52 }
 0xb0a   :  { %510 = vrot.lane.b32.xlu0 %v508_v53, %s1087_s13 }
 0xb7c   :  { %v511_v54 = vpop.permute.xlu0 %510 }
 0xb7d   :  { %v513_v55 = vadd.f32 %v511_v54, %v448_v46 }
 0xb7f   :  { %1059 = vtanh.f32 %v513_v55  ;;  %v703_v55 = vld [vmem:[#allocation2 + $0x30] sm:$0xff] }
 0xb8c   :  { %v1060_v56 = vpop.eup %1059 }
 0xb8d   :  { %v515_v57 = vsub.f32 %v1255_v37, %v1060_v56 }
 0xb8f   :  { %517 = vrot.lane.b32.xlu1 %v515_v57, %s1089_s15 }
 0xc01   :  { %v518_v58 = vpop.permute.xlu1 %517 }
 0xc02   :  { %v520_v59 = vmul.f32 %v1058_v51, %v518_v58 }
 0xc04   :  { %522 = vrot.lane.b32.xlu0 %v520_v59, %s1088_s3 }
 0xc76   :  { %v523_v60 = vpop.permute.xlu0 %522 }
 0xc77   :  { %v1273_v61 = vadd.f32 %v1060_v56, %v523_v60 }
 0xc79   :  { %v534_v62 = vpack.c.bf16 %v1273_v61, %v1273_v61 }
 0xc7b   :  { %536 = vrot.lane.b32.xlu1 %v534_v62, %s1087_s13 }
 0xced   :  { %v537_v63 = vpop.permute.xlu1 %536 }
 0xcee   :  { %997 = vmatmul.mubr.msk.bf16.vlgmr.msra.gmra.mxu0 %vm27_vm0, %v537_v63 }
 0xcef   :  { %1009 = vmatpush3.bf16.msra.mxu0 %v1139_v2  ;;  %1012 = vmatprep.mubr.msk.bf16.mxu0 %vm1086_vm1, %v1085_v0 }
 0xcf0   :  { %1010 = vmatprep.subr.bf16.mxu0 %v1085_v0 }
 0xcf3   :  { %1011 = vmatpush3.bf16.msra.mxu0 %v1148_v4 }
 0xdae   :  { %v575_v1 = vpop.f32.mrf.mxu0 }
 0xdaf   :  { %v588_v3 = vadd.f32 %v575_v1, %v1180_v10  ;;  %v581_v11 = vadd.f32 %v575_v1, %v533_v9 }
 0xdb0   :  { %v998_v6 = vpop.f32.mrf.mxu0 }
 0xdb1   :  { %590 = vrot.lane.b32.xlu0 %v588_v3, %s1087_s13  ;;  %v907_v12 = vmul.f32 -1.442695, %v581_v11 }
 0xdb2   :  { %v578_v7 = vpop.f32.mrf.mxu0 }
 0xdb3   :  { %1061 = vpow2.f32 %v907_v12 }
 0xdb4   :  { %v999_v8 = vpop.f32.mrf.mxu0 }
 0xdc0   :  { %v1062_v14 = vpop.eup %1061 }
 0xdc1   :  { %v585_v15 = vadd.f32 1.0, %v1062_v14 }
 0xdc3   :  { %1063 = vrcp.f32 %v585_v15 }
 0xdd0   :  { %v1064_v16 = vpop.eup %1063 }
 0xe23   :  { %v591_v17 = vpop.permute.xlu0 %590 }
 0xe24   :  { %v593_v18 = vmul.f32 %v1064_v16, %v591_v17 }
 0xe26   :  { %595 = vrot.lane.b32.xlu1 %v593_v18, %s1087_s13 }
 0xe98   :  { %v596_v19 = vpop.permute.xlu1 %595 }
 0xe99   :  { %v598_v13 = vadd.f32 %v596_v19, %v533_v9 }
 0xe9b   :  { %1065 = vtanh.f32 %v598_v13 }
 0xea8   :  { %v1066_v20 = vpop.eup %1065 }
 0xea9   :  { %v600_v21 = vsub.f32 %v1273_v61, %v1066_v20 }
 0xeab   :  { %602 = vrot.lane.b32.xlu0 %v600_v21, %s1089_s15 }
 0xf1d   :  { %v603_v22 = vpop.permute.xlu0 %602 }
 0xf1e   :  { %v605_v23 = vmul.f32 %v1064_v16, %v603_v22 }
 0xf20   :  { %607 = vrot.lane.b32.xlu1 %v605_v23, %s1088_s3 }
 0xf92   :  { %v608_v24 = vpop.permute.xlu1 %607 }
 0xf93   :  { %v1290_v25 = vadd.f32 %v1066_v20, %v608_v24  ;;  %v788_v20 = vld [vmem:[#allocation2 + $0x38] sm:$0xff] }
 0xf95   :  { %v619_v26 = vpack.c.bf16 %v1290_v25, %v1290_v25 }
 0xf97   :  { %621 = vrot.lane.b32.xlu0 %v619_v26, %s1087_s13 }
0x1009   :  { %v622_v27 = vpop.permute.xlu0 %621 }
0x100a   :  { %1005 = vmatmul.mubr.msk.bf16.vlgmr.msra.gmra.mxu1 %vm27_vm0, %v622_v27 }
0x100b   :  { %1017 = vmatpush3.bf16.msra.mxu1 %v1139_v2  ;;  %1020 = vmatprep.mubr.msk.bf16.mxu1 %vm1086_vm1, %v1085_v0 }
0x100c   :  { %1018 = vmatprep.subr.bf16.mxu1 %v1085_v0 }
0x100f   :  { %1019 = vmatpush3.bf16.msra.mxu1 %v1148_v4 }
0x10ca   :  { %v660_v28 = vpop.f32.mrf.mxu1 }
0x10cb   :  { %v673_v29 = vadd.f32 %v660_v28, %v1180_v10  ;;  %v666_v34 = vadd.f32 %v660_v28, %v618_v33 }
0x10cc   :  { %v1006_v30 = vpop.f32.mrf.mxu1 }
0x10cd   :  { %675 = vrot.lane.b32.xlu1 %v673_v29, %s1087_s13  ;;  %v910_v35 = vmul.f32 -1.442695, %v666_v34 }
0x10ce   :  { %v663_v31 = vpop.f32.mrf.mxu1 }
0x10cf   :  { %1067 = vpow2.f32 %v910_v35 }
0x10d0   :  { %v1007_v32 = vpop.f32.mrf.mxu1 }
0x10dc   :  { %v1068_v2 = vpop.eup %1067 }
0x10dd   :  { %v670_v36 = vadd.f32 1.0, %v1068_v2 }
0x10df   :  { %1069 = vrcp.f32 %v670_v36 }
0x10ec   :  { %v1070_v38 = vpop.eup %1069 }
0x113f   :  { %v676_v39 = vpop.permute.xlu1 %675 }
0x1140   :  { %v678_v0 = vmul.f32 %v1070_v38, %v676_v39 }
0x1142   :  { %680 = vrot.lane.b32.xlu0 %v678_v0, %s1087_s13 }
0x11b4   :  { %v681_v4 = vpop.permute.xlu0 %680 }
0x11b5   :  { %v683_v40 = vadd.f32 %v681_v4, %v618_v33 }
0x11b7   :  { %1071 = vtanh.f32 %v683_v40 }
0x11c4   :  { %v1072_v42 = vpop.eup %1071 }
0x11c5   :  { %v685_v43 = vsub.f32 %v1290_v25, %v1072_v42 }
0x11c7   :  { %687 = vrot.lane.b32.xlu1 %v685_v43, %s1089_s15 }
0x1239   :  { %v688_v44 = vpop.permute.xlu1 %687 }
0x123a   :  { %v690_v45 = vmul.f32 %v1070_v38, %v688_v44 }
0x123c   :  { %692 = vrot.lane.b32.xlu0 %v690_v45, %s1088_s3 }
0x12ae   :  { %v693_v46 = vpop.permute.xlu0 %692 }
0x12af   :  { %v1307_v47 = vadd.f32 %v1072_v42, %v693_v46 }
0x12b1   :  { %v704_v48 = vpack.c.bf16 %v1307_v47, %v1307_v47 }
0x12b3   :  { %706 = vrot.lane.b32.xlu1 %v704_v48, %s1087_s13 }
0x1325   :  { %v707_v49 = vpop.permute.xlu1 %706 }
0x1326   :  { %1013 = vmatmul.mubr.msk.bf16.vlgmr.msra.gmra.mxu0 %vm27_vm0, %v707_v49 }
0x13e6   :  { %v745_v50 = vpop.f32.mrf.mxu0 }
0x13e7   :  { %v758_v51 = vadd.f32 %v745_v50, %v1180_v10  ;;  %v751_v56 = vadd.f32 %v745_v50, %v703_v55 }
0x13e8   :  { %v1014_v52 = vpop.f32.mrf.mxu0 }
0x13e9   :  { %760 = vrot.lane.b32.xlu0 %v758_v51, %s1087_s13  ;;  %v913_v57 = vmul.f32 -1.442695, %v751_v56 }
0x13ea   :  { %v748_v53 = vpop.f32.mrf.mxu0 }
0x13eb   :  { %1073 = vpow2.f32 %v913_v57 }
0x13ec   :  { %v1015_v54 = vpop.f32.mrf.mxu0 }
0x13f8   :  { %v1074_v58 = vpop.eup %1073 }
0x13f9   :  { %v755_v59 = vadd.f32 1.0, %v1074_v58 }
0x13fb   :  { %1075 = vrcp.f32 %v755_v59 }
0x1408   :  { %v1076_v60 = vpop.eup %1075 }
0x145b   :  { %v761_v62 = vpop.permute.xlu0 %760 }
0x145c   :  { %v763_v63 = vmul.f32 %v1076_v60, %v761_v62 }
0x145e   :  { %765 = vrot.lane.b32.xlu1 %v763_v63, %s1087_s13 }
0x14d0   :  { %v766_v1 = vpop.permute.xlu1 %765 }
0x14d1   :  { %v768_v3 = vadd.f32 %v766_v1, %v703_v55 }
0x14d3   :  { %1077 = vtanh.f32 %v768_v3 }
0x14e0   :  { %v1078_v6 = vpop.eup %1077 }
0x14e1   :  { %v770_v7 = vsub.f32 %v1307_v47, %v1078_v6 }
0x14e3   :  { %772 = vrot.lane.b32.xlu0 %v770_v7, %s1089_s15 }
0x1555   :  { %v773_v8 = vpop.permute.xlu0 %772 }
0x1556   :  { %v775_v9 = vmul.f32 %v1076_v60, %v773_v8 }
0x1558   :  { %777 = vrot.lane.b32.xlu1 %v775_v9, %s1088_s3 }
0x15ca   :  { %v778_v11 = vpop.permute.xlu1 %777 }
0x15cb   :  { %v780_v12 = vadd.f32 %v1078_v6, %v778_v11 }
0x15cd   :  { %v789_v14 = vpack.c.bf16 %v780_v12, %v780_v12 }
0x15cf   :  { %791 = vrot.lane.b32.xlu0 %v789_v14, %s1087_s13 }
0x1641   :  { %v792_v15 = vpop.permute.xlu0 %791 }
0x1642   :  { %1021 = vmatmul.mubr.msk.bf16.vlgmr.msra.gmra.mxu1 %vm27_vm0, %v792_v15 }
0x1702   :  { %v830_v16 = vpop.f32.mrf.mxu1 }
0x1703   :  { %v843_v17 = vadd.f32 %v830_v16, %v1180_v10  ;;  %v836_v21 = vadd.f32 %v830_v16, %v788_v20 }
0x1704   :  { %v1022_v18 = vpop.f32.mrf.mxu1 }
0x1705   :  { %845 = vrot.lane.b32.xlu1 %v843_v17, %s1087_s13  ;;  %v916_v22 = vmul.f32 -1.442695, %v836_v21 }
0x1706   :  { %v833_v19 = vpop.f32.mrf.mxu1 }
0x1707   :  { %1079 = vpow2.f32 %v916_v22 }
0x1708   :  { %v1023_v13 = vpop.f32.mrf.mxu1 }
0x1714   :  { %v1080_v23 = vpop.eup %1079 }
0x1715   :  { %v840_v24 = vadd.f32 1.0, %v1080_v23 }
0x1717   :  { %1081 = vrcp.f32 %v840_v24 }
0x1724   :  { %v1082_v26 = vpop.eup %1081 }
0x1777   :  { %v846_v27 = vpop.permute.xlu1 %845 }
0x1778   :  { %v848_v28 = vmul.f32 %v1082_v26, %v846_v27 }
0x177a   :  { %850 = vrot.lane.b32.xlu0 %v848_v28, %s1087_s13 }
0x17ec   :  { %v851_v29 = vpop.permute.xlu0 %850 }
0x17ed   :  { %v853_v30 = vadd.f32 %v851_v29, %v788_v20 }
0x17ef   :  { %1083 = vtanh.f32 %v853_v30 }
0x17fc   :  { %v1084_v10 = vpop.eup %1083 }
0x17fd   :  { %v855_v31 = vsub.f32 %v780_v12, %v1084_v10 }
0x17ff   :  { %857 = vrot.lane.b32.xlu1 %v855_v31, %s1089_s15 }
0x1803   :  { %273 = vrot.lane.b32.xlu1 %v1201_v41, %s1087_s13 }
0x1807   :  { %442 = vrot.lane.b32.xlu1 %v1255_v37, %s1087_s13 }
0x180b   :  { %612 = vrot.lane.b32.xlu1 %v1290_v25, %s1087_s13 }
0x180f   :  { %782 = vrot.lane.b32.xlu1 %v780_v12, %s1087_s13 }
0x1871   :  { %v858_v32 = vpop.permute.xlu1 %857 }
0x1872   :  { %v860_v33 = vmul.f32 %v1082_v26, %v858_v32 }
0x1874   :  { %862 = vrot.lane.b32.xlu0 %v860_v33, %s1088_s3 }
0x1875   :  { %v274_v34 = vpop.permute.xlu1 %273 }
0x1876   :  { %276 = vst.msk [vmem:[%s1382_s5] sm:$0xff] %vm27_vm0, %v274_v34 }
0x1878   :  { %357 = vrot.lane.b32.xlu0 %v1229_v5, %s1087_s13 }
0x1879   :  { %v443_v41 = vpop.permute.xlu1 %442 }
0x187a   :  { %902 = vst.msk [vmem:[%s1382_s5 + $0x10] sm:$0xff] %vm27_vm0, %v443_v41 }
0x187c   :  { %527 = vrot.lane.b32.xlu0 %v1273_v61, %s1087_s13 }
0x187d   :  { %v613_v37 = vpop.permute.xlu1 %612 }
0x187e   :  { %908 = vst.msk [vmem:[%s1382_s5 + $0x20] sm:$0xff] %vm27_vm0, %v613_v37 }
0x1880   :  { %697 = vrot.lane.b32.xlu0 %v1307_v47, %s1087_s13 }
0x1881   :  { %v783_v25 = vpop.permute.xlu1 %782 }
0x1882   :  { %914 = vst.msk [vmem:[%s1382_s5 + $0x30] sm:$0xff] %vm27_vm0, %v783_v25 }
0x18e6   :  { %v863_v5 = vpop.permute.xlu0 %862 }
0x18e7   :  { %v865_v35 = vadd.f32 %v1084_v10, %v863_v5 }
0x18e9   :  { %867 = vrot.lane.b32.xlu0 %v865_v35, %s1087_s13 }
0x18ea   :  { %v358_v61 = vpop.permute.xlu0 %357 }
0x18eb   :  { %899 = vst.msk [vmem:[%s1382_s5 + $0x8] sm:$0xff] %vm27_vm0, %v358_v61 }
0x18ee   :  { %v528_v2 = vpop.permute.xlu0 %527 }
0x18ef   :  { %905 = vst.msk [vmem:[%s1382_s5 + $0x18] sm:$0xff] %vm27_vm0, %v528_v2 }
0x18f2   :  { %v698_v36 = vpop.permute.xlu0 %697 }
0x18f3   :  { %911 = vst.msk [vmem:[%s1382_s5 + $0x28] sm:$0xff] %vm27_vm0, %v698_v36 }
0x195b   :  { %v868_v38 = vpop.permute.xlu0 %867 }
0x195c   :  { %917 = vst.msk [vmem:[%s1382_s5 + $0x38] sm:$0xff] %vm27_vm0, %v868_v38  ;;  %872 = vst.msk [vmem:[%s1378_s6] sm:$0xff] %vm27_vm0, %v868_v38 }

</bundles_post_ra>
